<compile_context>
chip_gen: v7x
topology: tpu7x:2x2x1
jax: 0.10.0
libtpu: 0.0.40
codegen_flags: <defaults>
</compile_context>

<pallas_src>
from functools import partial
from typing import Callable, Dict, List

import jax
import jax.numpy as jnp
from jax.experimental import pallas as pl
from jax.experimental.pallas import tpu as pltpu


def _round_up(x: int, m: int) -> int:
    return pl.cdiv(x, m) * m


def _pick_tile(total: int, cap: int) -> int:
    """Largest multiple-of-128 divisor of `total` (itself a multiple of 128) <= cap."""
    best = 128
    t = 128
    lim = min(cap, total)
    while t <= lim:
        if total % t == 0:
            best = t
        t += 128
    return best


# ----------------------------------------------------------------------------
# Pallas kernel: tiled matmul + bias (the inner module's forward)
# ----------------------------------------------------------------------------
def _linear_kernel(x_ref, w_ref, b_ref, o_ref, acc_ref):
    # x_ref: (tm, tk), w_ref: (tk, tn), b_ref: (1, tn) f32, o_ref: (tm, tn)
    # acc_ref: (tm, tn) f32 VMEM scratch, resident across the K grid axis.
    @pl.when(pl.program_id(2) == 0)
    def _init():
        # Fold the bias into the accumulator init (saves a VPU add in finalize).
        acc_ref[...] = jnp.broadcast_to(b_ref[...], acc_ref.shape)

    acc_ref[...] += jnp.dot(x_ref[...], w_ref[...],
                            preferred_element_type=jnp.float32)

    @pl.when(pl.program_id(2) == pl.num_programs(2) - 1)
    def _finalize():
        o_ref[...] = acc_ref[...].astype(o_ref.dtype)


def _tiled_linear(x_p, wt_p, b_p, *, tm, tn, tk):
    """out_p = x_p @ wt_p + b_p with all operands pre-padded to tile multiples."""
    Mp, Kp = x_p.shape
    Kp2, Np = wt_p.shape
    assert Kp == Kp2 and Mp % tm == 0 and Np % tn == 0 and Kp % tk == 0
    grid = (Mp // tm, Np // tn, Kp // tk)

    dsz = jnp.dtype(x_p.dtype).itemsize
    # Working-set budget: double-buffered x / W / bias / out tiles + f32 acc.
    vmem_need = (2 * (tm * tk + tk * tn) * dsz
                 + 2 * tn * 4
                 + 2 * tm * tn * dsz
                 + tm * tn * 4)
    # Generous but bounded: never below the 32 MiB default, never above 48 MiB
    # (safe headroom even on v7x's 64 MiB physical VMEM; raises v5e's 16 MiB).
    vmem_limit = int(min(max(2 * vmem_need, 32 * 2**20), 48 * 2**20))

    cost = pl.CostEstimate(
        flops=2 * Mp * Np * Kp,
        bytes_accessed=(Mp * Kp * dsz * (Np // tn)     # x streamed once per N block
                        + Kp * Np * dsz * (Mp // tm)   # W streamed once per M block
                        + Mp * Np * dsz                # output written once
                        + Np * 4),                     # bias
        transcendentals=0)

    return pl.pallas_call(
        _linear_kernel,
        out_shape=jax.ShapeDtypeStruct((Mp, Np), x_p.dtype),
        grid_spec=pltpu.PrefetchScalarGridSpec(
            num_scalar_prefetch=0,
            grid=grid,
            in_specs=[
                pl.BlockSpec((tm, tk), lambda i, j, k: (i, k)),
                pl.BlockSpec((tk, tn), lambda i, j, k: (k, j)),
                # bias depends only on the N axis -> stays VMEM-resident over K
                pl.BlockSpec((1, tn), lambda i, j, k: (0, j)),
            ],
            out_specs=pl.BlockSpec((tm, tn), lambda i, j, k: (i, j)),
            scratch_shapes=[pltpu.VMEM((tm, tn), jnp.float32)],
        ),
        compiler_params=pltpu.CompilerParams(
            dimension_semantics=("parallel", "parallel", "arbitrary"),
            vmem_limit_bytes=vmem_limit),
        cost_estimate=cost,
    )(x_p, wt_p, b_p)


@partial(jax.jit, static_argnames=("tm", "tn", "tk", "n_out"))
def _linear_forward(x, wt_p, b_p, *, tm, tn, tk, n_out):
    """y = x @ W^T + b given pre-padded W^T / bias; pads/slices only if needed."""
    M, K = x.shape
    Kp, Np = wt_p.shape
    Mp = _round_up(M, tm)
    x = x.astype(wt_p.dtype)
    if (Mp != M) or (Kp != K):
        # Zero K-padding contributes zero to the accumulator -> exact result.
        x = jnp.pad(x, ((0, Mp - M), (0, Kp - K)))
    out_p = _tiled_linear(x, wt_p, b_p, tm=tm, tn=tn, tk=tk)
    if (Mp != M) or (Np != n_out):
        out_p = out_p[:M, :n_out]
    return out_p


# ----------------------------------------------------------------------------
# Inner "module": a Linear layer whose forward is the Pallas kernel above.
# ----------------------------------------------------------------------------
class PallasLinearModule:
    """torch.nn.Linear equivalent backed by the tiled Pallas kernel.

    Weight is stored (out, in) like torch.nn.Linear; the lane-dense padded
    transpose W^T (K_pad, N_pad) and padded f32 bias are cached once at
    construction so there is no per-call transpose / re-pad of the parameters.
    Default storage dtype is bf16 (f32 accumulation inside the kernel).
    """

    def __init__(self, in_features: int, out_features: int, key: jax.Array,
                 dtype=jnp.bfloat16):
        kw, kb = jax.random.split(key)
        self.in_features = in_features
        self.out_features = out_features
        self.dtype = dtype
        self.weight = (jax.random.normal(kw, (out_features, in_features),
                                         jnp.float32) * 0.02).astype(dtype)
        self.bias = jax.random.normal(kb, (out_features,), jnp.float32) * 0.01

        # Padded parameter dims (multiples of 128) and lane-dense tile sizes
        # chosen as exact divisors so padding never has to change per call.
        self._k_pad = _round_up(in_features, 128)
        self._n_pad = _round_up(out_features, 128)
        self.tk = _pick_tile(self._k_pad, 1024)
        self._tn_full = _pick_tile(self._n_pad, 512)

        # Cache padded W^T and bias once (no per-call HBM transpose pass).
        self._wt_padded = jnp.pad(
            self.weight.T.astype(dtype),
            ((0, self._k_pad - in_features), (0, self._n_pad - out_features)))
        self._b_padded = jnp.pad(
            self.bias.reshape(1, out_features).astype(jnp.float32),
            ((0, 0), (0, self._n_pad - out_features)))

    def _pick_tm(self, M: int) -> int:
        if M >= 512:
            return 512
        if M >= 256:
            return 256
        if M >= 128:
            return 128
        # bf16 packs 16 rows per sublane group; f32 packs 8.
        gran = 16 if jnp.dtype(self.dtype).itemsize == 2 else 8
        return _round_up(M, gran)

    def __call__(self, x: jax.Array) -> jax.Array:
        assert x.ndim == 2 and x.shape[1] == self.in_features
        M = x.shape[0]
        tm = self._pick_tm(M)
        Mp = _round_up(M, tm)
        tn = self._tn_full
        # v7x megacore: if M collapses to one block, keep >=2 blocks along N
        # (both "parallel" axes at 1 block would leave a TensorCore idle).
        if (Mp // tm) == 1 and (self._n_pad // tn) < 2 and self._n_pad >= 256:
            tn = _pick_tile(self._n_pad, tn // 2)
        return _linear_forward(x, self._wt_padded, self._b_padded,
                               tm=tm, tn=tn, tk=self.tk,
                               n_out=self.out_features)


# ----------------------------------------------------------------------------
# NamedModule: dict-in / dict-out routing wrapper (faithful to the PyTorch code)
# ----------------------------------------------------------------------------
class NamedModule:
    def __init__(self, module: Callable, from_names: List[str], to_names: List[str]):
        self.module = module
        self.from_names = from_names
        self.to_names = to_names

    def forward(self, name2tensor: Dict[str, jax.Array]) -> Dict[str, jax.Array]:
        inputs = [name2tensor[name] for name in self.from_names]
        res = self.module(*inputs)
        if isinstance(res, jax.Array):   # single-tensor result -> wrap in list
            res = [res]
        return dict(zip(self.to_names, res))

    def __call__(self, name2tensor: Dict[str, jax.Array]) -> Dict[str, jax.Array]:
        return self.forward(name2tensor)


if __name__ == "__main__":
    key = jax.random.PRNGKey(0)
    k1, k2, k3, k4 = jax.random.split(key, 4)
    HIGH = jax.lax.Precision.HIGHEST

    # --- Case 1: tiny demo shape (padding path, 1x1x1 grid), default bf16 ------
    SEQ, HIDDEN = 8, 32
    inner = PallasLinearModule(HIDDEN, HIDDEN, k1)            # bf16 default
    named = NamedModule(inner, from_names=["x"], to_names=["y"])
    x = jax.random.normal(k2, (SEQ, HIDDEN), jnp.float32)
    out = named({"x": x, "unused_extra": jnp.zeros((1,), jnp.float32)})
    y = jax.block_until_ready(out["y"])
    x_bf = x.astype(jnp.bfloat16).astype(jnp.float32)
    w_bf = inner.weight.astype(jnp.float32)
    y_ref = jnp.dot(x_bf, w_bf.T, precision=HIGH) + inner.bias
    assert y.shape == (SEQ, HIDDEN)
    assert y.dtype == jnp.bfloat16
    assert set(out.keys()) == {"y"}
    assert jnp.allclose(y.astype(jnp.float32), y_ref, atol=2e-2, rtol=2e-2)

    # --- Case 2: f32 path, M padding + multi-block M grid -----------------------
    M2, K2, N2 = 200, 384, 256
    inner2 = PallasLinearModule(K2, N2, k3, dtype=jnp.float32)
    named2 = NamedModule(inner2, from_names=["h"], to_names=["o"])
    x2 = jax.random.normal(k4, (M2, K2), jnp.float32)
    y2 = jax.block_until_ready(named2({"h": x2})["o"])
    y2_ref = jnp.dot(x2, inner2.weight.T, precision=HIGH) + inner2.bias
    assert y2.shape == (M2, N2)
    assert jnp.allclose(y2, y2_ref, atol=1e-3, rtol=1e-3)

    # --- Case 3: bf16, K-axis reduction across the grid + N-split for megacore --
    M3, K3, N3 = 256, 1536, 512
    inner3 = PallasLinearModule(K3, N3, k3)                   # bf16 default
    named3 = NamedModule(inner3, from_names=["h"], to_names=["o"])
    x3 = jax.random.normal(k4, (M3, K3), jnp.float32)
    y3 = jax.block_until_ready(named3({"h": x3})["o"])
    x3_bf = x3.astype(jnp.bfloat16).astype(jnp.float32)
    w3_bf = inner3.weight.astype(jnp.float32)
    y3_ref = jnp.dot(x3_bf, w3_bf.T, precision=HIGH) + inner3.bias
    assert y3.shape == (M3, N3)
    assert y3.dtype == jnp.bfloat16
    assert jnp.allclose(y3.astype(jnp.float32), y3_ref, atol=5e-2, rtol=5e-2)

    print("KERNEL_OK")
</pallas_src>

<mosaic_0001>
module attributes {stable_mosaic.version = 11 : i64} {
  func.func @_linear_kernel(%arg0: i32, %arg1: i32, %arg2: i32, %arg3: memref<16x128xbf16, #tpu.memory_space<vmem>>, %arg4: memref<128x128xbf16, #tpu.memory_space<vmem>>, %arg5: memref<1x128xf32, #tpu.memory_space<vmem>>, %arg6: memref<16x128xbf16, #tpu.memory_space<vmem>>, %arg7: memref<16x128xf32, #tpu.memory_space<vmem>>) attributes {dimension_semantics = [#tpu.dimension_semantics<parallel>, #tpu.dimension_semantics<parallel>, #tpu.dimension_semantics<arbitrary>], iteration_bounds = array<i64: 1, 1, 1>, scalar_prefetch = 0 : i64, scratch_operands = 1 : i64, tpu.core_type = #tpu.core_type<tc>, window_params = [{transform_indices = @transform_0, window_bounds = array<i64: 16, 128>}, {transform_indices = @transform_1, window_bounds = array<i64: 128, 128>}, {transform_indices = @transform_2, window_bounds = array<i64: 1, 128>}, {transform_indices = @transform_3, window_bounds = array<i64: 16, 128>}]} {
    %c0_i32 = arith.constant 0 : i32
    %0 = arith.cmpi eq, %arg2, %c0_i32 : i32
    %1 = arith.extui %0 : i1 to i32
    %c0_i32_0 = arith.constant 0 : i32
    %2 = arith.cmpi ne, %1, %c0_i32_0 : i32
    scf.if %2 {
      %c0_10 = arith.constant 0 : index
      %c0_11 = arith.constant 0 : index
      %12 = vector.load %arg5[%c0_10, %c0_11] : memref<1x128xf32, #tpu.memory_space<vmem>>, vector<1x128xf32>
      %13 = vector.shape_cast %12 : vector<1x128xf32> to vector<1x128xf32>
      %14 = vector.broadcast %13 : vector<1x128xf32> to vector<16x128xf32>
      %c0_12 = arith.constant 0 : index
      %c0_13 = arith.constant 0 : index
      %15 = vector.load %arg7[%c0_12, %c0_13] : memref<16x128xf32, #tpu.memory_space<vmem>>, vector<16x128xf32>
      tpu.vector_store %arg7[%c0_12, %c0_13], %14 {strides = array<i32>} : memref<16x128xf32, #tpu.memory_space<vmem>>, vector<16x128xf32>,
    } else {
    }
    %c0 = arith.constant 0 : index
    %c0_1 = arith.constant 0 : index
    %3 = vector.load %arg7[%c0, %c0_1] : memref<16x128xf32, #tpu.memory_space<vmem>>, vector<16x128xf32>
    %c0_2 = arith.constant 0 : index
    %c0_3 = arith.constant 0 : index
    %4 = vector.load %arg3[%c0_2, %c0_3] : memref<16x128xbf16, #tpu.memory_space<vmem>>, vector<16x128xbf16>
    %c0_4 = arith.constant 0 : index
    %c0_5 = arith.constant 0 : index
    %5 = vector.load %arg4[%c0_4, %c0_5] : memref<128x128xbf16, #tpu.memory_space<vmem>>, vector<128x128xbf16>
    %cst = arith.constant dense<0.000000e+00> : vector<16x128xf32>
    %6 = tpu.matmul %4, %5, %cst {dimension_numbers = #tpu.dot_dimension_numbers<[1], [0], [0], [1], [0, 0, 1, 1], [], []>} : vector<16x128xbf16>, vector<128x128xbf16>, vector<16x128xf32> -> vector<16x128xf32>
    %7 = arith.addf %3, %6 : vector<16x128xf32>
    %c0_6 = arith.constant 0 : index
    %c0_7 = arith.constant 0 : index
    %8 = vector.load %arg7[%c0_6, %c0_7] : memref<16x128xf32, #tpu.memory_space<vmem>>, vector<16x128xf32>
    tpu.vector_store %arg7[%c0_6, %c0_7], %7 {strides = array<i32>} : memref<16x128xf32, #tpu.memory_space<vmem>>, vector<16x128xf32>,
    %c0_i32_8 = arith.constant 0 : i32
    %9 = arith.cmpi eq, %arg2, %c0_i32_8 : i32
    %10 = arith.extui %9 : i1 to i32
    %c0_i32_9 = arith.constant 0 : i32
    %11 = arith.cmpi ne, %10, %c0_i32_9 : i32
    scf.if %11 {
      %c0_10 = arith.constant 0 : index
      %c0_11 = arith.constant 0 : index
      %12 = vector.load %arg7[%c0_10, %c0_11] : memref<16x128xf32, #tpu.memory_space<vmem>>, vector<16x128xf32>
      %13 = arith.truncf %12 : vector<16x128xf32> to vector<16x128xbf16>
      %c0_12 = arith.constant 0 : index
      %c0_13 = arith.constant 0 : index
      %14 = vector.load %arg6[%c0_12, %c0_13] : memref<16x128xbf16, #tpu.memory_space<vmem>>, vector<16x128xbf16>
      tpu.vector_store %arg6[%c0_12, %c0_13], %13 {strides = array<i32>} : memref<16x128xbf16, #tpu.memory_space<vmem>>, vector<16x128xbf16>,
    } else {
    }
    return
  }
  func.func @transform_0(%arg0: i32, %arg1: i32, %arg2: i32) -> (i32, i32) {
    %c0_i32 = arith.constant 0 : i32
    return %arg0, %arg2 : i32, i32
  }
  func.func @transform_1(%arg0: i32, %arg1: i32, %arg2: i32) -> (i32, i32) {
    %c0_i32 = arith.constant 0 : i32
    return %arg2, %arg1 : i32, i32
  }
  func.func @transform_2(%arg0: i32, %arg1: i32, %arg2: i32) -> (i32, i32) {
    %c0_i32 = arith.constant 0 : i32
    %c0_i32_0 = arith.constant 0 : i32
    return %c0_i32, %arg1 : i32, i32
  }
  func.func @transform_3(%arg0: i32, %arg1: i32, %arg2: i32) -> (i32, i32) {
    %c0_i32 = arith.constant 0 : i32
    return %arg0, %arg1 : i32, i32
  }
}

</mosaic_0001>

<bundles_post_ra>
// kernel: _linear_forward.1
= control target key start
LH: loop header
LB: loop body
LE: loop exit
PB: predicated region body
PF: predicated region fallthrough
CT: control target
= control target key end

     0   :  { %8 = vsyncpa [#allocation4], 0  ;;  %s267_s12 = smov [#allocation3]   ;;  %s313_s0 = inlined_call_operand.vmem [shape: bf16[16,128], index: 0, kind: input, shape index: {}]   ;;  %s314_s1 = inlined_call_operand.hbm [shape: bf16[128,128], index: 1, kind: input, shape index: {}]   ;;  %s315_s2 = inlined_call_operand.vmem [shape: f32[1,128], index: 2, kind: input, shape index: {}]   ;;  %s316_s3 = inlined_call_operand.vmem [shape: bf16[16,128], index: 3, kind: output, shape index: {}]  }
   0x1   :  { %s16_s13 = sshll.u32 %s267_s12, 4  ;;  %s243_s16 = scalar_lea.hbm %s314_s1, 1024  ;;  %s17_s13 = int_to_ptr.vmem [resolvable:$true] %s16_s13 }
   0x2   :  { %p244_p0 = scmp.ne.s32.totalorder %s314_s1, %s243_s16  ;;  %p247_p1 = scmp.lt.u32.totalorder %s243_s16, %s314_s1 }
   0x4   :  { %p249_p2 = pnand %p247_p1, %p244_p0 }
   0x6   :  { %252 = shalt.err (!%p249_p2)
}
   0x7   :  { %s253_s21 = scalar_lea.vmem %s17_s13, 1024  ;;  %p258_p4 = scmp.lt.s32.totalorder %s17_s13, %s17_s13 }
   0x8   :  { %p254_p3 = scmp.ne.s32.totalorder %s17_s13, %s253_s21  ;;  %p259_p5 = scmp.lt.s32.totalorder %s253_s21, %s253_s21 }
   0xa   :  { %p260_p6 = por %p259_p5, %p258_p4 }
   0xc   :  { %p261_p7 = pnand %p260_p6, %p254_p3 }
   0xe   :  { %264 = shalt.err (!%p261_p7)
}
   0xf   :  { %s268_s22 = smov 64   ;;  %s269_s23 = smov 4  }
  0x10   :  { %22 = dma.hbm_to_vmem [thread:$0]  %s314_s1, 1024, %s17_s13, [#allocation4], %s268_s22, %s268_s22, %s269_s23  }
  0x11   :  { %265 = dma.done.wait [#allocation4], 1024  }
  0x12   :  { %266 = vsyncadd [#allocation4], 4294966272  ;;  %v270_v0 = vmov 0.0   ;;  %vm271_vm0 = vmmov 0   ;;  %v234_v1 = vld [vmem:[#allocation3] sm:$0xff]   ;;  %v235_v2 = vld [vmem:[#allocation3 + $0x8] sm:$0xff]  }
  0x13   :  { %209 = vmatprep.subr.bf16.mxu0 %v270_v0  ;;  %225 = vmatprep.mubr.msk.bf16.mxu0 %vm271_vm0, %v270_v0  ;;  %v236_v3 = vld [vmem:[#allocation3 + $0x10] sm:$0xff]   ;;  %v237_v4 = vld [vmem:[#allocation3 + $0x18] sm:$0xff]   ;;  %v238_v5 = vld [vmem:[#allocation3 + $0x20] sm:$0xff]  }
  0x14   :  { %210 = vmatpush3.bf16.msra.mxu0 %v234_v1  ;;  %v239_v6 = vld [vmem:[#allocation3 + $0x28] sm:$0xff]   ;;  %v240_v7 = vld [vmem:[#allocation3 + $0x30] sm:$0xff]   ;;  %v241_v8 = vld [vmem:[#allocation3 + $0x38] sm:$0xff]  }
  0x15   :  { %211 = vmatprep.subr.bf16.mxu0 %v270_v0  ;;  %v242_v9 = vld [vmem:[%s313_s0] sm:$0xff]  }
  0x16   :  { %v181_v10 = vld [vmem:[%s315_s2] ss:$0 sm:$0xff] }
  0x18   :  { %212 = vmatpush3.bf16.msra.mxu0 %v235_v2 }
  0x19   :  { %213 = vmatprep.subr.bf16.mxu0 %v270_v0 }
  0x1c   :  { %214 = vmatpush3.bf16.msra.mxu0 %v236_v3 }
  0x1d   :  { %215 = vmatprep.subr.bf16.mxu0 %v270_v0 }
  0x20   :  { %216 = vmatpush3.bf16.msra.mxu0 %v237_v4 }
  0x21   :  { %217 = vmatprep.subr.bf16.mxu0 %v270_v0 }
  0x24   :  { %218 = vmatpush3.bf16.msra.mxu0 %v238_v5 }
  0x25   :  { %219 = vmatprep.subr.bf16.mxu0 %v270_v0 }
  0x28   :  { %220 = vmatpush3.bf16.msra.mxu0 %v239_v6 }
  0x29   :  { %221 = vmatprep.subr.bf16.mxu0 %v270_v0 }
  0x2c   :  { %222 = vmatpush3.bf16.msra.mxu0 %v240_v7 }
  0x2d   :  { %223 = vmatprep.subr.bf16.mxu0 %v270_v0 }
  0x30   :  { %224 = vmatpush3.bf16.msra.mxu0 %v241_v8 }
  0x33   :  { %226 = vmatmul.mubr.bf16.vlgmr.msra.gmra.mrb[0].mxu0 %v242_v9 }
 0x106   :  { %v150_v11 = vpop.f32.mrb[0].mxu0 }
 0x107   :  { %v227_v12 = vpop.f32.mrb[1].mxu0  ;;  %v157_v14 = vadd.f32 %v181_v10, %v150_v11 }
 0x108   :  { %v153_v13 = vpop.f32.mrb[2].mxu0 }
 0x109   :  { %v158_v15 = vadd.f32 %v181_v10, %v153_v13  ;;  %v228_v16 = vpop.f32.mrb[3].mxu0 }
 0x10b   :  { %v198_v17 = vpack.c.bf16 %v158_v15, %v157_v14 }
 0x10d   :  { %199 = vst [vmem:[%s316_s3] sm:$0xff] %v198_v17  }
 0x10e   :  { %180 = vsyncpa [#allocation4], 1 }

</bundles_post_ra>
